<compile_context>
chip_gen: v5e
topology: v5e:2x2
jax: 0.10.0
libtpu: 0.0.40
codegen_flags: <defaults>
</compile_context>

<pallas_src>
import functools
import math

import jax
import jax.numpy as jnp
from jax import lax
from jax.experimental import pallas as pl
from jax.experimental.pallas import tpu as pltpu


def _se_atn_kernel(x_ref, w1t_ref, w2t_ref, out_ref, acc_ref, *,
                   inv_hw, hw_true, hw_tile, chunk, n_chunks, mask_tail):
    # x_ref:   (b_tile, C, hw_tile)     lane-dense spatial tile
    # w1t_ref: (C, HID)                 first FC weight, pre-transposed
    # w2t_ref: (HID, C)                 second FC weight, pre-transposed
    # out_ref: (b_tile, 1, C)           channel attention weights
    # acc_ref: (b_tile, C, chunk) f32   per-lane partial sums (persist across s axis)
    s = pl.program_id(1)

    @pl.when(s == 0)
    def _():
        acc_ref[...] = jnp.zeros_like(acc_ref)

    base = s * hw_tile
    if mask_tail:
        lane_iota = lax.broadcasted_iota(jnp.int32, (1, 1, chunk), 2)

    def load_chunk(off):
        v = x_ref[:, :, pl.ds(off, chunk)].astype(jnp.float32)
        if mask_tail:
            idx = base + off + lane_iota
            v = jnp.where(idx < hw_true, v, 0.0)
        return v

    # Hot loop: pure VPU adds of 128-lane chunks (no per-tile XLU lane reduce).
    if n_chunks == 1:
        acc_ref[...] += load_chunk(0)
    else:
        def body(j, carry):
            off = pl.multiple_of(j * chunk, chunk)
            acc_ref[...] += load_chunk(off)
            return carry
        lax.fori_loop(0, n_chunks, body, 0, unroll=min(8, n_chunks))

    @pl.when(s == pl.num_programs(1) - 1)
    def _():
        # Single cross-lane reduce + tiny SE MLP, once per batch block.
        pooled = jnp.sum(acc_ref[...], axis=-1) * inv_hw                  # (b_tile, C)
        y1 = jnp.dot(pooled, w1t_ref[...].astype(jnp.float32),
                     preferred_element_type=jnp.float32)                  # (b_tile, HID)
        y1 = jnp.maximum(y1, 0.0)
        y2 = jnp.dot(y1, w2t_ref[...].astype(jnp.float32),
                     preferred_element_type=jnp.float32)                  # (b_tile, C)
        y2 = jax.nn.sigmoid(y2)
        out_ref[...] = y2.reshape(out_ref.shape).astype(out_ref.dtype)


def _tpu_tuning():
    """Per-generation (block byte budget, vmem-limit cap, split-batch-for-megacore)."""
    block_budget = 6 * 1024 * 1024        # safe default, sized for v7x
    limit_cap = 48 * 1024 * 1024
    split_batch = True                    # keep >= 2 batch blocks (2 TCs per chip)
    try:
        vmem_cap = int(pltpu.get_tpu_info().vmem_capacity_bytes)
        if vmem_cap > 80 * 1024 * 1024:   # v5e / v6e: 128 MiB VMEM, single TC
            split_batch = False
            limit_cap = 96 * 1024 * 1024
            kind = ""
            try:
                kind = jax.devices()[0].device_kind.lower()
            except Exception:
                pass
            if ("v5 lite" in kind) or ("v5e" in kind) or ("v5lite" in kind):
                block_budget = 4 * 1024 * 1024   # v5e: ~0.8 TB/s, gains saturate early
            else:
                block_budget = 8 * 1024 * 1024   # v6e: ~1.4 TB/s
        else:                             # v7x: 64 MiB VMEM per TC, 3.2 TB/s, 2 TCs
            block_budget = 6 * 1024 * 1024
            limit_cap = 48 * 1024 * 1024
            split_batch = True
    except Exception:
        pass
    return block_budget, limit_cap, split_batch


def se_atn(x, w1, w2):
    """x: (B, C, H, W); w1: (HID, C); w2: (C, HID).  Returns (B, C, 1, 1)."""
    B, C, H, W = x.shape
    HW = H * W
    HID = w1.shape[0]
    assert w1.shape == (HID, C) and w2.shape == (C, HID)
    itemsize = x.dtype.itemsize

    # Lane-dense layout + pre-transposed weights (no in-kernel transpose).
    x_flat = x.reshape(B, C, HW)
    w1t = jnp.transpose(w1)   # (C, HID)
    w2t = jnp.transpose(w2)   # (HID, C)

    block_budget, limit_cap, split_batch = _tpu_tuning()

    # --- spatial tile (lane axis): multiple of 128 whenever HW >= 128 ----------
    if HW >= 128:
        hw_aligned = (HW // 128) * 128                                 # <= HW
        budget_lanes = max(128, (block_budget // max(C * itemsize, 1)) // 128 * 128)
        hw_tile = min(hw_aligned, budget_lanes)
        chunk = 128
    else:
        hw_tile = HW                                                   # full-extent dim
        chunk = HW
    n_s = pl.cdiv(HW, hw_tile)
    mask_tail = (HW % hw_tile) != 0        # ragged tail -> mask in-kernel (no HBM pad)
    n_chunks = hw_tile // chunk

    # --- batch blocking when a whole per-batch slab fits the byte budget -------
    per_step_bytes = C * hw_tile * itemsize
    if n_s == 1:
        b_tile = max(1, min(B, block_budget // max(per_step_bytes, 1)))
        if split_batch and B >= 2:
            b_tile = max(1, min(b_tile, (B + 1) // 2))   # >= 2 "parallel" blocks
    else:
        b_tile = 1
    n_b = pl.cdiv(B, b_tile)

    block_bytes = b_tile * C * hw_tile * itemsize
    vmem_limit = int(min(limit_cap,
                         max(32 * 1024 * 1024, 2 * block_bytes + 8 * 1024 * 1024)))

    kernel = functools.partial(
        _se_atn_kernel,
        inv_hw=1.0 / float(HW), hw_true=HW, hw_tile=hw_tile,
        chunk=chunk, n_chunks=n_chunks, mask_tail=mask_tail)

    cost = pl.CostEstimate(
        flops=2 * B * C * HW + 4 * B * C * HID,
        transcendentals=B * C,
        bytes_accessed=B * C * HW * itemsize
                       + 2 * C * HID * w1.dtype.itemsize
                       + B * C * itemsize)

    out3 = pl.pallas_call(
        kernel,
        out_shape=jax.ShapeDtypeStruct((B, 1, C), x.dtype),
        grid_spec=pltpu.PrefetchScalarGridSpec(
            num_scalar_prefetch=0,
            grid=(n_b, n_s),
            in_specs=[
                pl.BlockSpec((b_tile, C, hw_tile), lambda b, s: (b, 0, s)),
                pl.BlockSpec((C, HID), lambda b, s: (0, 0)),
                pl.BlockSpec((HID, C), lambda b, s: (0, 0)),
            ],
            out_specs=pl.BlockSpec((b_tile, 1, C), lambda b, s: (b, 0, 0)),
            scratch_shapes=[pltpu.VMEM((b_tile, C, chunk), jnp.float32)],
        ),
        compiler_params=pltpu.CompilerParams(
            dimension_semantics=("parallel", "arbitrary"),
            vmem_limit_bytes=vmem_limit,
        ),
        cost_estimate=cost,
    )(x_flat, w1t, w2t)

    return out3[:, 0, :].reshape(B, C, 1, 1)


def _se_atn_ref(x, w1, w2):
    """Pure-JAX reference mirroring the PyTorch forward."""
    B, C = x.shape[0], x.shape[1]
    pooled = jnp.mean(x, axis=(2, 3))                      # (B, C)
    y1 = jnp.maximum(pooled @ w1.T, 0.0)                   # (B, HID)
    y2 = jax.nn.sigmoid(y1 @ w2.T)                         # (B, C)
    return y2.reshape(B, C, 1, 1)


def _make_case(key, B, C, H, W, reduction):
    k0, k1, k2 = jax.random.split(key, 3)
    HID = max(1, C // reduction)
    x = jax.random.normal(k0, (B, C, H, W), dtype=jnp.float32)
    w1 = jax.random.normal(k1, (HID, C), dtype=jnp.float32) * (1.0 / math.sqrt(C))
    w2 = jax.random.normal(k2, (C, HID), dtype=jnp.float32) * (1.0 / math.sqrt(HID))
    return x, w1, w2


if __name__ == "__main__":
    key = jax.random.PRNGKey(0)
    keys = jax.random.split(key, 3)

    # Primary case: SEAtn(channel=64, reduction=16), B=2, 16x16 feature map.
    x, w1, w2 = _make_case(keys[0], B=2, C=64, H=16, W=16, reduction=16)
    out = jax.block_until_ready(se_atn(x, w1, w2))
    ref = _se_atn_ref(x, w1, w2)
    assert out.shape == (2, 64, 1, 1)
    assert jnp.allclose(out, ref, atol=1e-5, rtol=1e-5)

    # Ragged H*W (200 lanes, not a multiple of 128): exercises the tail mask + multi-step sum.
    x, w1, w2 = _make_case(keys[1], B=1, C=32, H=10, W=20, reduction=8)
    out = jax.block_until_ready(se_atn(x, w1, w2))
    assert jnp.allclose(out, _se_atn_ref(x, w1, w2), atol=1e-5, rtol=1e-5)

    # Tiny spatial (H*W < 128) + ragged batch blocking.
    x, w1, w2 = _make_case(keys[2], B=3, C=16, H=7, W=7, reduction=4)
    out = jax.block_until_ready(se_atn(x, w1, w2))
    assert jnp.allclose(out, _se_atn_ref(x, w1, w2), atol=1e-5, rtol=1e-5)

    print("KERNEL_OK")
</pallas_src>

<mosaic_0001>
module attributes {stable_mosaic.version = 11 : i64} {
  func.func @_se_atn_kernel(%arg0: i32, %arg1: i32, %arg2: memref<1x64x256xf32, #tpu.memory_space<vmem>>, %arg3: memref<64x4xf32, #tpu.memory_space<vmem>>, %arg4: memref<4x64xf32, #tpu.memory_space<vmem>>, %arg5: memref<1x1x64xf32, #tpu.memory_space<vmem>>, %arg6: memref<1x64x128xf32, #tpu.memory_space<vmem>>) attributes {dimension_semantics = [#tpu.dimension_semantics<parallel>, #tpu.dimension_semantics<arbitrary>], iteration_bounds = array<i64: 2, 1>, scalar_prefetch = 0 : i64, scratch_operands = 1 : i64, tpu.core_type = #tpu.core_type<tc>, window_params = [{transform_indices = @transform_0, window_bounds = array<i64: 1, 64, 256>}, {pipeline_mode = #tpu.pipeline_mode<synchronous>, transform_indices = @transform_1, window_bounds = array<i64: 64, 4>}, {pipeline_mode = #tpu.pipeline_mode<synchronous>, transform_indices = @transform_2, window_bounds = array<i64: 4, 64>}, {transform_indices = @transform_3, window_bounds = array<i64: 1, 1, 64>}]} {
    %c0_i32 = arith.constant 0 : i32
    %0 = arith.cmpi eq, %arg1, %c0_i32 : i32
    %1 = arith.extui %0 : i1 to i32
    %c0_i32_0 = arith.constant 0 : i32
    %2 = arith.cmpi ne, %1, %c0_i32_0 : i32
    scf.if %2 {
      %cst = arith.constant 0.000000e+00 : f32
      %20 = vector.broadcast %cst : f32 to vector<1x64x128xf32>
      %c0_20 = arith.constant 0 : index
      %c0_21 = arith.constant 0 : index
      %c0_22 = arith.constant 0 : index
      %21 = vector.load %arg6[%c0_20, %c0_21, %c0_22] : memref<1x64x128xf32, #tpu.memory_space<vmem>>, vector<1x64x128xf32>
      tpu.vector_store %arg6[%c0_20, %c0_21, %c0_22], %20 {strides = array<i32>} : memref<1x64x128xf32, #tpu.memory_space<vmem>>, vector<1x64x128xf32>,
    } else {
    }
    %c0_i32_1 = arith.constant 0 : i32
    %c128_i32 = arith.constant 128 : i32
    %3 = arith.muli %c0_i32_1, %c128_i32 : i32
    %4 = tpu.assume_multiple %3, 128 : i32
    %c0 = arith.constant 0 : index
    %c0_2 = arith.constant 0 : index
    %c0_3 = arith.constant 0 : index
    %5 = vector.load %arg6[%c0, %c0_2, %c0_3] : memref<1x64x128xf32, #tpu.memory_space<vmem>>, vector<1x64x128xf32>
    %c0_4 = arith.constant 0 : index
    %c0_5 = arith.constant 0 : index
    %6 = arith.index_cast %4 : i32 to index
    %7 = vector.load %arg2[%c0_4, %c0_5, %6] : memref<1x64x256xf32, #tpu.memory_space<vmem>>, vector<1x64x128xf32>
    %8 = arith.addf %5, %7 : vector<1x64x128xf32>
    %c0_6 = arith.constant 0 : index
    %c0_7 = arith.constant 0 : index
    %c0_8 = arith.constant 0 : index
    %9 = vector.load %arg6[%c0_6, %c0_7, %c0_8] : memref<1x64x128xf32, #tpu.memory_space<vmem>>, vector<1x64x128xf32>
    tpu.vector_store %arg6[%c0_6, %c0_7, %c0_8], %8 {strides = array<i32>} : memref<1x64x128xf32, #tpu.memory_space<vmem>>, vector<1x64x128xf32>,
    %c1_i32 = arith.constant 1 : i32
    %c128_i32_9 = arith.constant 128 : i32
    %10 = arith.muli %c1_i32, %c128_i32_9 : i32
    %11 = tpu.assume_multiple %10, 128 : i32
    %c0_10 = arith.constant 0 : index
    %c0_11 = arith.constant 0 : index
    %c0_12 = arith.constant 0 : index
    %12 = vector.load %arg6[%c0_10, %c0_11, %c0_12] : memref<1x64x128xf32, #tpu.memory_space<vmem>>, vector<1x64x128xf32>
    %c0_13 = arith.constant 0 : index
    %c0_14 = arith.constant 0 : index
    %13 = arith.index_cast %11 : i32 to index
    %14 = vector.load %arg2[%c0_13, %c0_14, %13] : memref<1x64x256xf32, #tpu.memory_space<vmem>>, vector<1x64x128xf32>
    %15 = arith.addf %12, %14 : vector<1x64x128xf32>
    %c0_15 = arith.constant 0 : index
    %c0_16 = arith.constant 0 : index
    %c0_17 = arith.constant 0 : index
    %16 = vector.load %arg6[%c0_15, %c0_16, %c0_17] : memref<1x64x128xf32, #tpu.memory_space<vmem>>, vector<1x64x128xf32>
    tpu.vector_store %arg6[%c0_15, %c0_16, %c0_17], %15 {strides = array<i32>} : memref<1x64x128xf32, #tpu.memory_space<vmem>>, vector<1x64x128xf32>,
    %c2_i32 = arith.constant 2 : i32
    %c0_i32_18 = arith.constant 0 : i32
    %17 = arith.cmpi eq, %arg1, %c0_i32_18 : i32
    %18 = arith.extui %17 : i1 to i32
    %c0_i32_19 = arith.constant 0 : i32
    %19 = arith.cmpi ne, %18, %c0_i32_19 : i32
    scf.if %19 {
      %c0_20 = arith.constant 0 : index
      %c0_21 = arith.constant 0 : index
      %c0_22 = arith.constant 0 : index
      %20 = vector.load %arg6[%c0_20, %c0_21, %c0_22] : memref<1x64x128xf32, #tpu.memory_space<vmem>>, vector<1x64x128xf32>
      %cst = arith.constant dense<0.000000e+00> : vector<1x64xf32>
      %21 = vector.multi_reduction <add>, %20, %cst [2] : vector<1x64x128xf32> to vector<1x64xf32>
      %cst_23 = arith.constant 3.906250e-03 : f32
      %22 = vector.broadcast %cst_23 : f32 to vector<1x64xf32>
      %23 = arith.mulf %21, %22 : vector<1x64xf32>
      %c0_24 = arith.constant 0 : index
      %c0_25 = arith.constant 0 : index
      %24 = vector.load %arg3[%c0_24, %c0_25] : memref<64x4xf32, #tpu.memory_space<vmem>>, vector<64x4xf32>
      %cst_26 = arith.constant dense<0.000000e+00> : vector<1x4xf32>
      %25 = tpu.matmul %23, %24, %cst_26 {dimension_numbers = #tpu.dot_dimension_numbers<[1], [0], [0], [1], [0, 0, 1, 1], [], []>} : vector<1x64xf32>, vector<64x4xf32>, vector<1x4xf32> -> vector<1x4xf32>
      %cst_27 = arith.constant 0.000000e+00 : f32
      %26 = vector.broadcast %cst_27 : f32 to vector<1x4xf32>
      %27 = arith.maximumf %25, %26 : vector<1x4xf32>
      %c0_28 = arith.constant 0 : index
      %c0_29 = arith.constant 0 : index
      %28 = vector.load %arg4[%c0_28, %c0_29] : memref<4x64xf32, #tpu.memory_space<vmem>>, vector<4x64xf32>
      %cst_30 = arith.constant dense<0.000000e+00> : vector<1x64xf32>
      %29 = tpu.matmul %27, %28, %cst_30 {dimension_numbers = #tpu.dot_dimension_numbers<[1], [0], [0], [1], [0, 0, 1, 1], [], []>} : vector<1x4xf32>, vector<4x64xf32>, vector<1x64xf32> -> vector<1x64xf32>
      %30 = arith.negf %29 : vector<1x64xf32>
      %31 = math.exp %30 : vector<1x64xf32>
      %cst_31 = arith.constant 1.000000e+00 : f32
      %32 = vector.broadcast %cst_31 : f32 to vector<1x64xf32>
      %33 = arith.addf %32, %31 : vector<1x64xf32>
      %34 = arith.divf %32, %33 : vector<1x64xf32>
      %35 = vector.shape_cast %34 : vector<1x64xf32> to vector<1x1x64xf32>
      %c0_32 = arith.constant 0 : index
      %c0_33 = arith.constant 0 : index
      %c0_34 = arith.constant 0 : index
      %36 = vector.load %arg5[%c0_32, %c0_33, %c0_34] : memref<1x1x64xf32, #tpu.memory_space<vmem>>, vector<1x1x64xf32>
      tpu.vector_store %arg5[%c0_32, %c0_33, %c0_34], %35 {strides = array<i32>} : memref<1x1x64xf32, #tpu.memory_space<vmem>>, vector<1x1x64xf32>,
    } else {
    }
    return
  }
  func.func @transform_0(%arg0: i32, %arg1: i32) -> (i32, i32, i32) {
    %c0_i32 = arith.constant 0 : i32
    %c0_i32_0 = arith.constant 0 : i32
    return %arg0, %c0_i32, %arg1 : i32, i32, i32
  }
  func.func @transform_1(%arg0: i32, %arg1: i32) -> (i32, i32) {
    %c0_i32 = arith.constant 0 : i32
    %c0_i32_0 = arith.constant 0 : i32
    %c0_i32_1 = arith.constant 0 : i32
    return %c0_i32, %c0_i32_0 : i32, i32
  }
  func.func @transform_2(%arg0: i32, %arg1: i32) -> (i32, i32) {
    %c0_i32 = arith.constant 0 : i32
    %c0_i32_0 = arith.constant 0 : i32
    %c0_i32_1 = arith.constant 0 : i32
    return %c0_i32, %c0_i32_0 : i32, i32
  }
  func.func @transform_3(%arg0: i32, %arg1: i32) -> (i32, i32, i32) {
    %c0_i32 = arith.constant 0 : i32
    %c0_i32_0 = arith.constant 0 : i32
    %c0_i32_1 = arith.constant 0 : i32
    return %arg0, %c0_i32, %c0_i32_0 : i32, i32, i32
  }
}

</mosaic_0001>

<bundles_post_ra>
// kernel: tpu_custom_call.1
= control target key start
LH: loop header
LB: loop body
LE: loop exit
PB: predicated region body
PF: predicated region fallthrough
CT: control target
= control target key end

     0   :  { %8 = vsyncpa [#allocation4], 0  ;;  %s906_s0 = inlined_call_operand.hbm [shape: f32[2,64,256], index: 0, kind: input, shape index: {}]   ;;  %s907_s1 = inlined_call_operand.vmem [shape: f32[64,4], index: 1, kind: input, shape index: {}]   ;;  %s908_s2 = inlined_call_operand.vmem [shape: f32[4,64], index: 2, kind: input, shape index: {}]   ;;  %s909_s3 = inlined_call_operand.hbm [shape: f32[2,1,64], index: 3, kind: output, shape index: {}]  }
   0x1   :  { %10 = vsyncpa [#allocation4 + $0x1], 0 }
   0x2   :  { %11 = vsyncpa [#allocation5], 0 }
   0x3   :  { %13 = vsyncpa [#allocation5 + $0x1], 0  ;;  %s758_s12 = smov 0   ;;  %s760_s13 = smov 0  }
   0x4   :  { %s762_s14 = smov 0   ;;  %s764_s15 = smov 0  }
   0x5   :  { %s766_s16 = smov 0   ;;  %s768_s17 = smov 0  }
   0x6 LB: > { %s530_s18 = sadd.s32 4294967295, %s734_s17   ;;  %s531_s19 = sadd.s32 4294967294, %s734_s17   ;;  %s734_s17 = sphi %s768_s17, %s19_s17   ;;  %s730_s16 = sphi %s766_s16, %s918_s16   ;;  %s726_s15 = sphi %s764_s15, %s917_s15   ;;  %s722_s14 = sphi %s762_s14, %s916_s14   ;;  %s718_s13 = sphi %s760_s13, %s915_s13   ;;  %s714_s12 = sphi %s758_s12, %s914_s12  }
   0x7   : > { %s31_s20 = sadd.s32 1, %s730_s16  ;;  %s40_s21 = sadd.s32 1, %s722_s14 }
   0x8   : > { %p33_p0 = scmp.ge.s32.totalorder %s31_s20, 2  ;;  %p47_p1 = scmp.ne.s32.totalorder %s722_s14, %s718_s13 }
   0x9   : > { %p48_p2 = scmp.eq.s32.totalorder %s734_s17, 0  ;;  %p53_p3 = scmp.ne.s32.totalorder %s718_s13, %s714_s12 }
   0xa   : > { %s920_s20 = smov (%p33_p0, %s31_s20), 0  ;;  %p54_p5 = scmp.eq.s32.totalorder %s530_s18, 0 }
   0xb   : > { %p799_p4 = por %p48_p2, %p47_p1  ;;  %s35_s23 = ssub.s32 %s730_s16, %s920_s20 }
   0xc   : > { %p119_p6 = scmp.eq.s32.totalorder %s530_s18, 1  ;;  %p38_p7 = scmp.eq.s32.totalorder %s35_s23, 0 }
   0xd   : > { %p805_p8 = por %p54_p5, %p53_p3  ;;  %p125_p10 = scmp.eq.s32.totalorder %s531_s19, 1 }
   0xe   : > { %p809_p9 = por %p119_p6, %p47_p1  ;;  %p533_p12 = scmp.ge.s32.totalorder %s734_s17, 2 }
   0xf   : > { %s814_s26 = scalar_select %p38_p7, %s722_s14, %s40_s21  }
  0x10   : > { %p816_p11 = por %p125_p10, %p53_p3  ;;  %p566_p13 = scmp.lt.s32.totalorder %s734_s17, 2 }
  0x11   : > { %s151_s28 = sand.u32 1, %s722_s14   ;;  %s553_s30 = sshll.u32 %s730_s16, 7 }
  0x12   : > { %s534_s29 = sshll.u32 %s151_s28, 7  ;;  %s162_s6 = scalar_lea.hbm %s906_s0, %s553_s30 }
  0x13   : > { %s155_s7 = scalar_lea.vmem [#allocation3], %s534_s29  ;;  %s163_s9 = sshll.u32 %s162_s6, 4  ;;  %s164_s9 = int_to_ptr.hbm [resolvable:$true] %s163_s9 }
  0x14   : > { %s165_s8 = sshll.u32 %s155_s7, 4  ;;  %p559_p0 = pnand %p566_p13, %p799_p4  ;;  %s166_s8 = int_to_ptr.vmem [resolvable:$true] %s165_s8 }
  0x15   : > { %p537_p1 = scmp.ge.s32.totalorder %s734_s17, 1  ;;  %s152_s10 = scalar_lea.sflag [#allocation4], %s151_s28 }
  0x16   : > { %s736_s11 = smov 256   ;;  %s737_s18 = smov 16  }
  0x17   : > { %561 = dma.hbm_to_vmem [thread:$0]  (!%p559_p0), %s164_s9, 2048, %s166_s8, %s152_s10, %s736_s11, %s736_s11, %s737_s18  }
  0x18   : > { %p173_p2 = scmp.lt.s32.totalorder %s734_s17, 3 }
  0x1a   : > { %p174_p3 = pnand %p537_p1, %p173_p2 }
  0x1b   : > { %s832_s19 = sand.u32 (!%p174_p3), 1, %s718_s13  }
  0x1c   : > { %177 = sbr.rel (%p174_p3) target bundleno = 460 (0x1cc), region = 32  ;;  %s538_s21 = sshll.u32 (!%p174_p3), %s832_s19, 7 }
  0x1d   : > { %s180_s23 = scalar_lea.sflag (!%p174_p3), [#allocation4], %s832_s19  ;;  %s183_s29 = scalar_lea.vmem (!%p174_p3), [#allocation3], %s538_s21 }
  0x21   : > { %705 = dma.done.wait (%p805_p8), %s180_s23, 2048  }
  0x22   : > { %707 = vsyncadd (%p805_p8), %s180_s23, 4294965248  ;;  %v227_v0 = vld [vmem:[%s183_s29] sm:$0xff]  ;;  %v539_v1 = vld [vmem:[%s183_s29 + $0x8] sm:$0xff]  ;;  %v335_v32 = vlaneseq  ;;  %vm340_vm0 = vcmask 130112   ;;  %vm344_vm1 = vcmask 195712   ;;  %vm348_vm2 = vcmask 261312   ;;  %s449_s4 = scalar_lea.hbm %s909_s3, %s726_s15 }
  0x23   : > { %v229_v2 = vld [vmem:[%s183_s29 + $0x20] sm:$0xff]  ;;  %v268_v3 = vadd.f32 %v539_v1, %v227_v0  ;;  %v541_v4 = vld [vmem:[%s183_s29 + $0x28] sm:$0xff]  ;;  %v228_v9 = vld [vmem:[%s183_s29 + $0x10] sm:$0xff]  ;;  %vm352_vm3 = vcmask 326912   ;;  %vm356_vm4 = vcmask 392512   ;;  %vm360_vm5 = vcmask 458112  }
  0x24   : > { %v231_v5 = vld [vmem:[%s183_s29 + $0x40] sm:$0xff]  ;;  %v543_v6 = vld [vmem:[%s183_s29 + $0x48] sm:$0xff]  ;;  %v270_v7 = vadd.f32 %v541_v4, %v229_v2  ;;  %v540_v10 = vld [vmem:[%s183_s29 + $0x18] sm:$0xff]  ;;  %v336_v36 = vand.u32 127, %v335_v32  ;;  %vm364_vm6 = vcmask 523712   ;;  %vm366_vm7 = vcmask 523264  }
  0x25   : > { %v272_v8 = vadd.f32 %v543_v6, %v231_v5  ;;  %295 = vadd.xlane.f32.xlu0 %v268_v3  ;;  %v230_v11 = vld [vmem:[%s183_s29 + $0x30] sm:$0xff]  ;;  %v542_v12 = vld [vmem:[%s183_s29 + $0x38] sm:$0xff]  ;;  %v269_v15 = vadd.f32 %v540_v10, %v228_v9  ;;  %v233_v18 = vld [vmem:[%s183_s29 + $0x60] sm:$0xff]  ;;  %vm395_vm8 = vcmask 1043456   ;;  %vm391_vm9 = vcmask 31744   ;;  %s205_s5 = scalar_lea.vmem [#allocation6], %s832_s19 }
  0x26   : > { %299 = vadd.xlane.f32.xlu1 %v270_v7  ;;  %v232_v13 = vld [vmem:[%s183_s29 + $0x50] sm:$0xff]  ;;  %v544_v14 = vld [vmem:[%s183_s29 + $0x58] sm:$0xff]  ;;  %v271_v16 = vadd.f32 %v542_v12, %v230_v11  ;;  %v545_v19 = vld [vmem:[%s183_s29 + $0x68] sm:$0xff]  ;;  %v338_v38 = vadd.s32 4294967288, %v336_v36  ;;  %v342_v39 = vadd.s32 4294967280, %v336_v36  ;;  %v346_v42 = vadd.s32 4294967272, %v336_v36 }
  0x27   : > { %303 = vadd.xlane.f32.xlu2 %v272_v8  ;;  %v273_v17 = vadd.f32 %v544_v14, %v232_v13  ;;  %v234_v20 = vld [vmem:[%s183_s29 + $0x70] sm:$0xff]  ;;  %v546_v21 = vld [vmem:[%s183_s29 + $0x78] sm:$0xff]  ;;  %v274_v22 = vadd.f32 %v545_v19, %v233_v18  ;;  %v324_v26 = vld [vmem:[%s907_s1 + $0x28] sm:$0xff]  ;;  %v350_v46 = vadd.s32 4294967264, %v336_v36  ;;  %v354_v53 = vadd.s32 4294967256, %v336_v36  ;;  %s451_s6 = sshll.u32 %s205_s5, 4  ;;  %s452_s6 = int_to_ptr.vmem [resolvable:$true] %s451_s6 }
  0x28   : > { %v275_v23 = vadd.f32 %v546_v21, %v234_v20  ;;  %v326_v24 = vld [vmem:[%s907_s1 + $0x38] sm:$0xff]  ;;  %v325_v25 = vld [vmem:[%s907_s1 + $0x30] sm:$0xff]  ;;  %v323_v27 = vld [vmem:[%s907_s1 + $0x20] sm:$0xff]  ;;  %v358_v59 = vadd.s32 4294967248, %v336_v36  ;;  %v362_v62 = vadd.s32 4294967240, %v336_v36  ;;  %s453_s7 = sshll.u32 %s449_s4, 4  ;;  %s454_s7 = int_to_ptr.hbm [resolvable:$true] %s453_s7 }
  0x29   : > { %377 = vmatpush.msra.mxu0 %v326_v24  ;;  %v322_v28 = vld [vmem:[%s907_s1 + $0x18] sm:$0xff]  ;;  %v321_v29 = vld [vmem:[%s907_s1 + $0x10] sm:$0xff]  ;;  %v320_v30 = vld [vmem:[%s907_s1 + $0x8] sm:$0xff]  ;;  %vm438_vm13 = vcmask 516096   ;;  %s441_s15 = scalar_lea.sflag [#allocation5], %s832_s19  ;;  %s666_s8 = sshra.s32 %s454_s7, 4  ;;  %s667_s8 = int_to_ptr.hbm [resolvable:$true] %s666_s8 }
  0x2a   : > { %v319_v31 = vld [vmem:[%s907_s1] sm:$0xff]  ;;  %s668_s9 = scalar_lea.hbm %s667_s8, 1  ;;  %s672_s18 = scalar_lea.hbm %s909_s3, 2 }
  0x2b   : > { %378 = vmatpush.msra.mxu0 %v325_v25  ;;  %v390_v8 = vld [vmem:[%s908_s2] sm:$0xf]  ;;  %p669_p4 = scmp.ne.s32.totalorder %s667_s8, %s668_s9  ;;  %p673_p7 = scmp.lt.s32.totalorder %s667_s8, %s909_s3 }
  0x2c   : > { %548 = vmatpush.msk.msra.mxu1 %vm395_vm8, %v390_v8  ;;  %p674_p8 = scmp.lt.s32.totalorder %s672_s18, %s668_s9 }
  0x2d   : > { %297 = vadd.xlane.f32.xlu0 %v269_v15  ;;  %379 = vmatpush.msra.mxu0 %v324_v26  ;;  %p670_p5 = pnand %p669_p4, %p809_p9 }
  0x2e   : > { %301 = vadd.xlane.f32.xlu1 %v271_v16  ;;  %p675_p10 = por %p674_p8, %p673_p7 }
  0x2f   : > { %305 = vadd.xlane.f32.xlu2 %v273_v17  ;;  %380 = vmatpush.msra.mxu0 %v323_v27  ;;  %p671_p6 = pneg %p670_p5 }
  0x31   : > { %381 = vmatpush.msra.mxu0 %v322_v28  ;;  %p676_p13 = pnand %p675_p10, %p671_p6 }
  0x33   : > { %382 = vmatpush.msra.mxu0 %v321_v29 }
  0x35   : > { %307 = vadd.xlane.f32.xlu0 %v274_v22  ;;  %383 = vmatpush.msra.mxu0 %v320_v30 }
  0x36   : > { %309 = vadd.xlane.f32.xlu1 %v275_v23 }
  0x37   : > { %384 = vmatpush.msra.mxu0 %v319_v31 }
  0x98   : > { %v296_v33 = vpop.xlane.xlu0 %295 }
  0x99   : > { %v300_v34 = vpop.xlane.xlu1 %299  ;;  %v311_v37 = vmul.f32 0.00390625, %v296_v33 }
  0x9a   : > { %v304_v35 = vpop.xlane.xlu2 %303  ;;  %v313_v40 = vmul.f32 0.00390625, %v300_v34 }
  0x9b   : > { %v337_v48 = vperm.slane %v311_v37, %v336_v36  ;;  %v315_v49 = vmul.f32 0.00390625, %v304_v35 }
  0x9c   : > { %v343_v51 = vperm.slane %v313_v40, %v342_v39 }
  0x9d   : > { %v351_v57 = vperm.slane %v315_v49, %v350_v46 }
  0xa0   : > { %v298_v41 = vpop.xlane.xlu0 %297 }
  0xa1   : > { %v312_v43 = vmul.f32 0.00390625, %v298_v41  ;;  %v302_v44 = vpop.xlane.xlu1 %301 }
  0xa2   : > { %v306_v45 = vpop.xlane.xlu2 %305  ;;  %v314_v47 = vmul.f32 0.00390625, %v302_v44 }
  0xa3   : > { %v339_v50 = vperm.slane %v312_v43, %v338_v38  ;;  %v316_v54 = vmul.f32 0.00390625, %v306_v45 }
  0xa4   : > { %v347_v52 = vperm.slane %v314_v47, %v346_v42 }
  0xa5   : > { %v341_v55 = vsel %vm340_vm0, %v339_v50, %v337_v48  ;;  %v355_v60 = vperm.slane %v316_v54, %v354_v53 }
  0xa6   : > { %v345_v56 = vsel %vm344_vm1, %v343_v51, %v341_v55 }
  0xa7   : > { %v349_v58 = vsel %vm348_vm2, %v347_v52, %v345_v56 }
  0xa8   : > { %v308_v61 = vpop.xlane.xlu0 %307  ;;  %v353_v1 = vsel %vm352_vm3, %v351_v57, %v349_v58 }
  0xa9   : > { %v317_v63 = vmul.f32 0.00390625, %v308_v61  ;;  %v310_v0 = vpop.xlane.xlu1 %309  ;;  %v357_v5 = vsel %vm356_vm4, %v355_v60, %v353_v1 }
  0xaa   : > { %v318_v2 = vmul.f32 0.00390625, %v310_v0 }
  0xab   : > { %v359_v3 = vperm.slane %v317_v63, %v358_v59 }
  0xac   : > { %v363_v4 = vperm.slane %v318_v2, %v362_v62 }
  0xad   : > { %v361_v6 = vsel %vm360_vm5, %v359_v3, %v357_v5 }
  0xae   : > { %v365_v7 = vsel %vm364_vm6, %v363_v4, %v361_v6 }
  0xaf   : > { %547 = vmatmul.msk.f32.vlgmr.msra.gmra.mxu0 %vm366_vm7, %v365_v7 }
 0x12c   : > { %v386_v9 = vpop.f32.mrf.mxu0 }
 0x12d   : > { %v389_v10 = vmax.f32 %v386_v9, 0.0 }
 0x12f   : > { %549 = vmatmul.msk.f32.vlgmr.msra.gmra.mxu1 %vm391_vm9, %v389_v10 }
 0x1ac   : > { %v416_v11 = vpop.f32.mrf.mxu1 }
 0x1ad   : > { %v550_v12 = vmul.f32 -1.442695, %v416_v11 }
 0x1af   : > { %618 = vpow2.f32 %v550_v12 }
 0x1b5   : > { %v619_v13 = vpop.eup %618 }
 0x1b6   : > { %v422_v14 = vadd.f32 1.0, %v619_v13 }
 0x1b8   : > { %620 = vrcp.f32 %v422_v14  ;;  %v434_v18 = vand.u32 2147483648, %v422_v14  ;;  %v432_v20 = vand.u32 2147483647, %v422_v14  ;;  %vm428_vm11 = vweird.f32 %v422_v14 }
 0x1ba   : > { %v435_v22 = vor.u32 1.1754944e-38, %v434_v18  ;;  %vm433_vm14 = vcmp.eq.f32.partialorder %v432_v20, 8.507059e+37 }
 0x1be   : > { %v621_v15 = vpop.eup %620 }
 0x1bf   : > { %v424_v16 = vmul.f32 %v621_v15, %v422_v14  ;;  %vm429_vm10 = vweird.f32 %v621_v15 }
 0x1c0   : > { %vm430_vm12 = vmor %vm428_vm11, %vm429_vm10 }
 0x1c1   : > { %v425_v17 = vsub.f32 1.0, %v424_v16 }
 0x1c3   : > { %v426_v19 = vmul.f32 %v621_v15, %v425_v17 }
 0x1c5   : > { %v427_v21 = vadd.f32 %v621_v15, %v426_v19 }
 0x1c7   : > { %v431_v23 = vsel %vm430_vm12, %v621_v15, %v427_v21 }
 0x1c8   : > { %v436_v24 = vsel %vm433_vm14, %v435_v22, %v431_v23 }
 0x1c9   : > { %439 = vst.msk [vmem:[%s205_s5] sm:$0x1] %vm438_vm13, %v436_v24 }
 0x1ca   : > { %679 = shalt.err (!%p676_p13)
}
 0x1cb   : > { %556 = dma.vmem_to_hbm [thread:$0]  (%p809_p9), %s452_s6, 16, %s454_s7, %s441_s15  }
 0x1cc PF: > { %s465_s19 = sand.u32 1, %s714_s12   ;;  %p563_p0 = pnand %p533_p12, %p816_p11 }
 0x1cd   : > { %s466_s29 = scalar_lea.sflag [#allocation5], %s465_s19 }
 0x1ce   : > { %p564_p1 = pneg %p563_p0 }
 0x1d0   : > { %709 = dma.done.wait (%p564_p1), %s466_s29, 16  }
 0x1d1   : > { %711 = vsyncadd (%p564_p1), %s466_s29, 4294967280  ;;  %s19_s17 = sadd.s32 1, %s734_s17   ;;  %s914_s12 = smov %s718_s13 }
 0x1d2   : > { %p16_p2 = scmp.ge.s32.totalorder %s19_s17, 4   ;;  %s915_s13 = smov %s722_s14 }
 0x1d3   : > { %s916_s14 = smov %s814_s26  ;;  %s917_s15 = smov %s730_s16 }
 0x1d4   : > { %s918_s16 = smov %s920_s20  ;;  %18 = sbr.rel (!%p16_p2) target bundleno = 6 (0x6), region = 86 }
 0x1d9   :  { %471 = vsyncpa [#allocation4], 1 }
 0x1da   :  { %473 = vsyncpa [#allocation4 + $0x1], 1 }
 0x1db   :  { %474 = vsyncpa [#allocation5], 1 }
 0x1dc   :  { %476 = vsyncpa [#allocation5 + $0x1], 1 }

</bundles_post_ra>
